<compile_context>
chip_gen: v5e
topology: v5e:2x2
jax: 0.10.0
libtpu: 0.0.40
codegen_flags: <defaults>
</compile_context>

<pallas_src>
import jax
import jax.numpy as jnp
from jax.experimental import pallas as pl
from jax.experimental.pallas import tpu as pltpu


_LANE = 128
_TARGET_BLOCK_BYTES = 6 * 1024 * 1024      # ~6 MiB per block
_VMEM_LIMIT_BYTES = 48 * 1024 * 1024       # covers 2 bufs x (in + out) with margin


def _silu_kernel(x_ref, o_ref):
    x = x_ref[...]
    xf = x.astype(jnp.float32)
    # sigmoid(x) == 0.5 * (tanh(x/2) + 1): a single EUP op (vs exp + recip),
    # numerically stable, and finite for any input (safe for OOB garbage in the
    # partial last row-block, whose masked store is dropped anyway).
    sig = 0.5 * (jnp.tanh(0.5 * xf) + 1.0)
    o_ref[...] = (xf * sig).astype(o_ref.dtype)


def silu(x: jax.Array) -> jax.Array:
    """Elementwise SiLU via a Pallas TPU kernel. Works for any input shape."""
    orig_shape = x.shape
    dtype = x.dtype
    n = x.size
    if n == 0:
        return x

    if x.ndim >= 2:
        # Collapse leading dims only: layout-preserving (minor dim untouched),
        # so no hidden relayout copies on input or output.
        x2 = x.reshape(-1, orig_shape[-1])
    else:
        # 1-D / 0-D: pick a lane-dense width if the size allows, else one row.
        W1 = next((w for w in (1024, 512, 256, _LANE) if n % w == 0), None)
        x2 = x.reshape(-1, W1) if W1 is not None else x.reshape(1, n)

    R, W = x2.shape
    itemsize = jnp.dtype(dtype).itemsize
    packing = max(1, 4 // itemsize)   # rows packed per sublane for narrow dtypes
    sub = 8 * packing                 # dtype-aware sublane-aligned row granularity

    # Row tile sized to ~6 MiB of data so the ~0.35 us per-grid-step overhead is
    # amortized (85%+ HBM roofline regime) while double-buffered in+out stays
    # far under the explicit VMEM limit on every TPU generation.
    tr = max(sub, _TARGET_BLOCK_BYTES // max(1, W * itemsize))
    if tr >= R:
        tr = R                            # single block == full extent (always legal)
    else:
        tr = max(sub, (tr // sub) * sub)  # aligned tile; partial last block is masked

    grid = (pl.cdiv(R, tr),)

    out = pl.pallas_call(
        _silu_kernel,
        out_shape=jax.ShapeDtypeStruct((R, W), dtype),
        grid_spec=pltpu.PrefetchScalarGridSpec(
            num_scalar_prefetch=0,
            grid=grid,
            in_specs=[pl.BlockSpec((tr, W), lambda i: (i, 0))],
            out_specs=pl.BlockSpec((tr, W), lambda i: (i, 0)),
        ),
        compiler_params=pltpu.CompilerParams(
            # "parallel" lets v7x shard the row axis across its 2 TensorCores;
            # neutral on single-TC v5e/v6e.
            dimension_semantics=("parallel",),
            vmem_limit_bytes=_VMEM_LIMIT_BYTES,
        ),
    )(x2)

    # Leading-dim-only expansion back to the original shape (layout-preserving
    # for ndim >= 2).
    return out.reshape(orig_shape)


if __name__ == "__main__":
    key = jax.random.PRNGKey(0)

    # Shape consistent with an MXMNet-style activation input.
    x = jax.random.normal(key, (2, 4, 16, 16), dtype=jnp.float32)
    y = jax.block_until_ready(silu(x))
    y_ref = x * jax.nn.sigmoid(x)
    assert y.shape == x.shape and y.dtype == x.dtype
    assert jnp.allclose(y, y_ref, atol=1e-6, rtol=1e-6)

    # Ragged size (last dim not a multiple of 128): full-extent block path.
    k2 = jax.random.PRNGKey(1)
    x2 = jax.random.normal(k2, (7, 13), dtype=jnp.float32)
    y2 = jax.block_until_ready(silu(x2))
    y2_ref = x2 * jax.nn.sigmoid(x2)
    assert y2.shape == x2.shape and y2.dtype == x2.dtype
    assert jnp.allclose(y2, y2_ref, atol=1e-6, rtol=1e-6)

    # Larger lane-dense, multi-block case (multiple grid steps, partial last block).
    k3 = jax.random.PRNGKey(2)
    x3 = jax.random.normal(k3, (8, 600, 1024), dtype=jnp.float32)
    y3 = jax.block_until_ready(silu(x3))
    y3_ref = x3 * jax.nn.sigmoid(x3)
    assert jnp.allclose(y3, y3_ref, atol=1e-6, rtol=1e-6)

    # bf16 input exercises the dtype-aware (16-row) sublane rounding + upcast path.
    k4 = jax.random.PRNGKey(3)
    x4 = jax.random.normal(k4, (512, 384), dtype=jnp.bfloat16)
    y4 = jax.block_until_ready(silu(x4))
    x4f = x4.astype(jnp.float32)
    y4_ref = (x4f * jax.nn.sigmoid(x4f)).astype(jnp.bfloat16)
    assert y4.shape == x4.shape and y4.dtype == x4.dtype
    assert jnp.allclose(y4.astype(jnp.float32), y4_ref.astype(jnp.float32),
                        atol=2e-2, rtol=2e-2)

    print("KERNEL_OK")
</pallas_src>

<mosaic_0001>
module attributes {stable_mosaic.version = 11 : i64} {
  func.func @_silu_kernel(%arg0: i32, %arg1: memref<128x16xf32, #tpu.memory_space<vmem>>, %arg2: memref<128x16xf32, #tpu.memory_space<vmem>>) attributes {dimension_semantics = [#tpu.dimension_semantics<parallel>], iteration_bounds = array<i64: 1>, scalar_prefetch = 0 : i64, scratch_operands = 0 : i64, tpu.core_type = #tpu.core_type<tc>, window_params = [{transform_indices = @transform_0, window_bounds = array<i64: 128, 16>}, {transform_indices = @transform_1, window_bounds = array<i64: 128, 16>}]} {
    %c0 = arith.constant 0 : index
    %c0_0 = arith.constant 0 : index
    %0 = vector.load %arg1[%c0, %c0_0] : memref<128x16xf32, #tpu.memory_space<vmem>>, vector<128x16xf32>
    %cst = arith.constant 5.000000e-01 : f32
    %1 = vector.broadcast %cst : f32 to vector<128x16xf32>
    %2 = arith.mulf %1, %0 : vector<128x16xf32>
    %3 = math.tanh %2 : vector<128x16xf32>
    %cst_1 = arith.constant 1.000000e+00 : f32
    %4 = vector.broadcast %cst_1 : f32 to vector<128x16xf32>
    %5 = arith.addf %3, %4 : vector<128x16xf32>
    %cst_2 = arith.constant 5.000000e-01 : f32
    %6 = vector.broadcast %cst_2 : f32 to vector<128x16xf32>
    %7 = arith.mulf %6, %5 : vector<128x16xf32>
    %8 = arith.mulf %0, %7 : vector<128x16xf32>
    %c0_3 = arith.constant 0 : index
    %c0_4 = arith.constant 0 : index
    %9 = vector.load %arg2[%c0_3, %c0_4] : memref<128x16xf32, #tpu.memory_space<vmem>>, vector<128x16xf32>
    tpu.vector_store %arg2[%c0_3, %c0_4], %8 {strides = array<i32>} : memref<128x16xf32, #tpu.memory_space<vmem>>, vector<128x16xf32>,
    return
  }
  func.func @transform_0(%arg0: i32) -> (i32, i32) {
    %c0_i32 = arith.constant 0 : i32
    %c0_i32_0 = arith.constant 0 : i32
    return %arg0, %c0_i32 : i32, i32
  }
  func.func @transform_1(%arg0: i32) -> (i32, i32) {
    %c0_i32 = arith.constant 0 : i32
    %c0_i32_0 = arith.constant 0 : i32
    return %arg0, %c0_i32 : i32, i32
  }
}

</mosaic_0001>

<bundles_post_ra>
// kernel: tpu_custom_call.1
= control target key start
LH: loop header
LB: loop body
LE: loop exit
PB: predicated region body
PF: predicated region fallthrough
CT: control target
= control target key end

     0   :  { %vm104_vm0 = vcmask 130048   ;;  %s335_s0 = inlined_call_operand.vmem [shape: f32[128,16], index: 0, kind: input, shape index: {}]   ;;  %s336_s1 = inlined_call_operand.vmem [shape: f32[128,16], index: 1, kind: output, shape index: {}]  }
   0x1   :  { %v8_v0 = vld [vmem:[%s335_s0] sm:$0xff]  ;;  %v9_v1 = vld [vmem:[%s335_s0 + $0x8] sm:$0xff]  ;;  %v176_v2 = vld [vmem:[%s335_s0 + $0x10] sm:$0xff] }
   0x2   :  { %v24_v3 = vmul.f32 0.5, %v8_v0  ;;  %v25_v4 = vmul.f32 0.5, %v9_v1  ;;  %v26_v5 = vmul.f32 0.5, %v176_v2  ;;  %v182_v6 = vld [vmem:[%s335_s0 + $0x18] sm:$0xff]  ;;  %v187_v7 = vld [vmem:[%s335_s0 + $0x20] sm:$0xff]  ;;  %v192_v8 = vld [vmem:[%s335_s0 + $0x28] sm:$0xff] }
   0x3   :  { %v27_v9 = vmul.f32 0.5, %v182_v6  ;;  %v198_v10 = vld [vmem:[%s335_s0 + $0x30] sm:$0xff]  ;;  %v28_v11 = vmul.f32 0.5, %v187_v7  ;;  %v204_v12 = vld [vmem:[%s335_s0 + $0x38] sm:$0xff]  ;;  %v29_v13 = vmul.f32 0.5, %v192_v8  ;;  %v210_v14 = vld [vmem:[%s335_s0 + $0x40] sm:$0xff] }
   0x4   :  { %125 = vtanh.f32 %v24_v3  ;;  %v30_v15 = vmul.f32 0.5, %v198_v10  ;;  %v216_v16 = vld [vmem:[%s335_s0 + $0x48] sm:$0xff]  ;;  %v31_v17 = vmul.f32 0.5, %v204_v12  ;;  %v222_v18 = vld [vmem:[%s335_s0 + $0x50] sm:$0xff]  ;;  %v32_v19 = vmul.f32 0.5, %v210_v14  ;;  %v228_v20 = vld [vmem:[%s335_s0 + $0x58] sm:$0xff] }
   0x5   :  { %127 = vtanh.f32 %v25_v4  ;;  %v33_v21 = vmul.f32 0.5, %v216_v16  ;;  %v234_v22 = vld [vmem:[%s335_s0 + $0x60] sm:$0xff]  ;;  %v239_v23 = vld [vmem:[%s335_s0 + $0x68] sm:$0xff]  ;;  %v34_v25 = vmul.f32 0.5, %v222_v18  ;;  %v245_v26 = vld [vmem:[%s335_s0 + $0x70] sm:$0xff]  ;;  %v35_v29 = vmul.f32 0.5, %v228_v20 }
   0x6   :  { %129 = vtanh.f32 %v26_v5  ;;  %v251_v30 = vld [vmem:[%s335_s0 + $0x78] sm:$0xff]  ;;  %v36_v33 = vmul.f32 0.5, %v234_v22  ;;  %v37_v34 = vmul.f32 0.5, %v239_v23  ;;  %v38_v38 = vmul.f32 0.5, %v245_v26 }
   0x7   :  { %131 = vtanh.f32 %v27_v9  ;;  %v39_v42 = vmul.f32 0.5, %v251_v30 }
   0x8   :  { %133 = vtanh.f32 %v28_v11 }
   0x9   :  { %135 = vtanh.f32 %v29_v13 }
   0xa   :  { %v126_v24 = vpop.eup %125  ;;  %137 = vtanh.f32 %v30_v15 }
   0xb   :  { %v128_v27 = vpop.eup %127  ;;  %v56_v28 = vadd.f32 1.0, %v126_v24  ;;  %139 = vtanh.f32 %v31_v17 }
   0xc   :  { %v130_v31 = vpop.eup %129  ;;  %v57_v32 = vadd.f32 1.0, %v128_v27  ;;  %141 = vtanh.f32 %v32_v19 }
   0xd   :  { %v132_v35 = vpop.eup %131  ;;  %v72_v36 = vmul.f32 0.5, %v56_v28  ;;  %v58_v37 = vadd.f32 1.0, %v130_v31  ;;  %143 = vtanh.f32 %v33_v21 }
   0xe   :  { %v134_v39 = vpop.eup %133  ;;  %v73_v40 = vmul.f32 0.5, %v57_v32  ;;  %v59_v41 = vadd.f32 1.0, %v132_v35  ;;  %145 = vtanh.f32 %v34_v25 }
   0xf   :  { %v136_v43 = vpop.eup %135  ;;  %v88_v44 = vmul.f32 %v72_v36, %v8_v0  ;;  %v74_v45 = vmul.f32 0.5, %v58_v37  ;;  %v60_v46 = vadd.f32 1.0, %v134_v39  ;;  %147 = vtanh.f32 %v35_v29 }
  0x10   :  { %v138_v47 = vpop.eup %137  ;;  %v89_v48 = vmul.f32 %v73_v40, %v9_v1  ;;  %v75_v49 = vmul.f32 0.5, %v59_v41  ;;  %v61_v50 = vadd.f32 1.0, %v136_v43  ;;  %149 = vtanh.f32 %v36_v33 }
  0x11   :  { %v140_v51 = vpop.eup %139  ;;  %105 = vst.msk [vmem:[%s336_s1] sm:$0xff] %vm104_vm0, %v88_v44  ;;  %v90_v52 = vmul.f32 %v74_v45, %v176_v2  ;;  %v76_v53 = vmul.f32 0.5, %v60_v46  ;;  %v62_v54 = vadd.f32 1.0, %v138_v47  ;;  %151 = vtanh.f32 %v37_v34 }
  0x12   :  { %v142_v55 = vpop.eup %141  ;;  %106 = vst.msk [vmem:[%s336_s1 + $0x8] sm:$0xff] %vm104_vm0, %v89_v48  ;;  %v91_v56 = vmul.f32 %v75_v49, %v182_v6  ;;  %v77_v57 = vmul.f32 0.5, %v61_v50  ;;  %v63_v58 = vadd.f32 1.0, %v140_v51  ;;  %153 = vtanh.f32 %v38_v38 }
  0x13   :  { %v144_v59 = vpop.eup %143  ;;  %107 = vst.msk [vmem:[%s336_s1 + $0x10] sm:$0xff] %vm104_vm0, %v90_v52  ;;  %v92_v60 = vmul.f32 %v76_v53, %v187_v7  ;;  %v78_v61 = vmul.f32 0.5, %v62_v54  ;;  %v64_v62 = vadd.f32 1.0, %v142_v55  ;;  %155 = vtanh.f32 %v39_v42 }
  0x14   :  { %v146_v63 = vpop.eup %145  ;;  %108 = vst.msk [vmem:[%s336_s1 + $0x18] sm:$0xff] %vm104_vm0, %v91_v56  ;;  %v93_v0 = vmul.f32 %v77_v57, %v192_v8  ;;  %v79_v1 = vmul.f32 0.5, %v63_v58  ;;  %v65_v2 = vadd.f32 1.0, %v144_v59 }
  0x15   :  { %v148_v3 = vpop.eup %147  ;;  %109 = vst.msk [vmem:[%s336_s1 + $0x20] sm:$0xff] %vm104_vm0, %v92_v60  ;;  %v94_v4 = vmul.f32 %v78_v61, %v198_v10  ;;  %v80_v5 = vmul.f32 0.5, %v64_v62  ;;  %v66_v6 = vadd.f32 1.0, %v146_v63 }
  0x16   :  { %v150_v7 = vpop.eup %149  ;;  %110 = vst.msk [vmem:[%s336_s1 + $0x28] sm:$0xff] %vm104_vm0, %v93_v0  ;;  %v95_v8 = vmul.f32 %v79_v1, %v204_v12  ;;  %v81_v9 = vmul.f32 0.5, %v65_v2  ;;  %v67_v11 = vadd.f32 1.0, %v148_v3 }
  0x17   :  { %v152_v13 = vpop.eup %151  ;;  %111 = vst.msk [vmem:[%s336_s1 + $0x30] sm:$0xff] %vm104_vm0, %v94_v4  ;;  %v96_v10 = vmul.f32 %v80_v5, %v210_v14  ;;  %v82_v15 = vmul.f32 0.5, %v66_v6  ;;  %v68_v17 = vadd.f32 1.0, %v150_v7 }
  0x18   :  { %v154_v19 = vpop.eup %153  ;;  %112 = vst.msk [vmem:[%s336_s1 + $0x38] sm:$0xff] %vm104_vm0, %v95_v8  ;;  %v97_v12 = vmul.f32 %v81_v9, %v216_v16  ;;  %v83_v21 = vmul.f32 0.5, %v67_v11  ;;  %v69_v24 = vadd.f32 1.0, %v152_v13 }
  0x19   :  { %v156_v25 = vpop.eup %155  ;;  %113 = vst.msk [vmem:[%s336_s1 + $0x40] sm:$0xff] %vm104_vm0, %v96_v10  ;;  %v98_v14 = vmul.f32 %v82_v15, %v222_v18  ;;  %v84_v27 = vmul.f32 0.5, %v68_v17  ;;  %v70_v28 = vadd.f32 1.0, %v154_v19 }
  0x1a   :  { %114 = vst.msk [vmem:[%s336_s1 + $0x48] sm:$0xff] %vm104_vm0, %v97_v12  ;;  %v99_v29 = vmul.f32 %v83_v21, %v228_v20  ;;  %v85_v16 = vmul.f32 0.5, %v69_v24  ;;  %v71_v31 = vadd.f32 1.0, %v156_v25 }
  0x1b   :  { %115 = vst.msk [vmem:[%s336_s1 + $0x50] sm:$0xff] %vm104_vm0, %v98_v14  ;;  %v100_v32 = vmul.f32 %v84_v27, %v234_v22  ;;  %v86_v33 = vmul.f32 0.5, %v70_v28 }
  0x1c   :  { %116 = vst.msk [vmem:[%s336_s1 + $0x58] sm:$0xff] %vm104_vm0, %v99_v29  ;;  %v101_v18 = vmul.f32 %v85_v16, %v239_v23  ;;  %v87_v34 = vmul.f32 0.5, %v71_v31 }
  0x1d   :  { %117 = vst.msk [vmem:[%s336_s1 + $0x60] sm:$0xff] %vm104_vm0, %v100_v32  ;;  %v102_v20 = vmul.f32 %v86_v33, %v245_v26 }
  0x1e   :  { %118 = vst.msk [vmem:[%s336_s1 + $0x68] sm:$0xff] %vm104_vm0, %v101_v18  ;;  %v103_v22 = vmul.f32 %v87_v34, %v251_v30 }
  0x1f   :  { %119 = vst.msk [vmem:[%s336_s1 + $0x70] sm:$0xff] %vm104_vm0, %v102_v20 }
  0x20   :  { %120 = vst.msk [vmem:[%s336_s1 + $0x78] sm:$0xff] %vm104_vm0, %v103_v22 }

</bundles_post_ra>
